<compile_context>
chip_gen: v7x
topology: tpu7x:2x2x1
jax: 0.10.0
libtpu: 0.0.40
codegen_flags: <defaults>
</compile_context>

<pallas_src>
import functools

import jax
import jax.numpy as jnp
from jax.experimental import pallas as pl
from jax.experimental.pallas import tpu as pltpu

GAMMA = 2.0   # applied as pt * pt below
ALPHA = 0.25


def _focal_loss_kernel(pred_ref, target_ref, out_ref, acc_ref, *,
                       tile_rows, tiles_per_part, n_rows, n_cols,
                       mask_possible):
    p = pl.program_id(0)   # "parallel" part axis (shards across TCs on v7x)
    i = pl.program_id(1)   # "arbitrary" reduction axis over row tiles

    @pl.when(i == 0)
    def _():
        acc_ref[...] = jnp.zeros_like(acc_ref)

    x = pred_ref[...].astype(jnp.float32)
    t = target_ref[...].astype(jnp.float32)

    # Shared exponential: e = exp(-|x|) feeds both the sigmoid and the
    # numerically-stable BCE-with-logits  max(x,0) - x*t + log1p(e).
    e = jnp.exp(-jnp.abs(x))
    inv = 1.0 / (1.0 + e)                       # exact; approx recip risks rtol
    ps = jnp.where(x >= 0.0, inv, e * inv)      # sigmoid(x)

    pt = ps + t - 2.0 * ps * t                  # (1-ps)*t + ps*(1-t)
    focal_weight = ((1.0 - ALPHA) + (2.0 * ALPHA - 1.0) * t) * (pt * pt)
    bce = jnp.maximum(x, 0.0) - x * t + jnp.log1p(e)
    loss = bce * focal_weight

    if tile_rows % 8 == 0:
        def _fold(v):
            # Sublane-group fold (tile_rows, C) -> (8, C): the reshape only
            # splits the sublane dim (never crosses (8,128) tiles) and the sum
            # over the leading axis lowers to pure VPU vreg adds.
            return v.reshape(tile_rows // 8, 8, n_cols).sum(axis=0)
    else:
        # Tiny-N path (tile_rows == N < 8): accumulator is full height.
        def _fold(v):
            return v

    if mask_possible:
        g = p * tiles_per_part + i               # unclamped global row-tile idx
        needs_mask = (g + 1) * tile_rows > n_rows

        @pl.when(jnp.logical_not(needs_mask))
        def _():
            acc_ref[...] += _fold(loss)

        @pl.when(needs_mask)
        def _():
            # Ragged / phantom tile: select (never multiply) so garbage rows
            # (possibly Inf/NaN from exp of junk) can't reach the accumulator.
            rows = (jax.lax.broadcasted_iota(jnp.int32, loss.shape, 0)
                    + g * tile_rows)
            acc_ref[...] += _fold(jnp.where(rows < n_rows, loss, 0.0))
    else:
        acc_ref[...] += _fold(loss)

    @pl.when(i == tiles_per_part - 1)
    def _():
        out_ref[...] = acc_ref[...]


def _default_num_parts():
    """2 parts only on chips with two TensorCores (v7x-class); 1 elsewhere."""
    try:
        kind = jax.devices()[0].device_kind.lower()
    except Exception:
        return 1
    return 2 if "v7" in kind else 1


def sigmoid_focal_loss_pallas(pred, target, *, num_parts=None,
                              target_block_bytes=2 << 20):
    """Equivalent of sigmoid_focal_loss(pred, target) with reduction='mean'."""
    N, C = pred.shape
    itemsize = jnp.dtype(pred.dtype).itemsize

    # Row tile: ~2 MiB per input block (multiple of 8 rows), never taller than N.
    rows_target = max(8, (target_block_bytes // max(1, C * itemsize)) // 8 * 8)
    if N >= 8:
        tile_rows = min(rows_target, (N // 8) * 8)
    else:
        tile_rows = N                         # full-dim exception for tiny N

    n_tiles = pl.cdiv(N, tile_rows)
    if num_parts is None:
        num_parts = _default_num_parts()
    num_parts = max(1, min(num_parts, n_tiles))
    tiles_per_part = pl.cdiv(n_tiles, num_parts)

    acc_rows = 8 if tile_rows % 8 == 0 else tile_rows
    mask_possible = (N % tile_rows != 0) or (num_parts * tiles_per_part != n_tiles)

    kernel = functools.partial(
        _focal_loss_kernel,
        tile_rows=tile_rows, tiles_per_part=tiles_per_part,
        n_rows=N, n_cols=C, mask_possible=mask_possible)

    # Clamp phantom tile indices so no block starts fully out of bounds; the
    # in-kernel row mask zeroes their contribution.
    in_spec = pl.BlockSpec(
        (tile_rows, C),
        lambda p, i: (jnp.minimum(p * tiles_per_part + i, n_tiles - 1), 0))

    cost = pl.CostEstimate(
        flops=20 * N * C,
        transcendentals=3 * N * C,
        bytes_accessed=2 * N * C * itemsize + num_parts * acc_rows * C * 4)

    partials = pl.pallas_call(
        kernel,
        out_shape=jax.ShapeDtypeStruct((num_parts * acc_rows, C), jnp.float32),
        grid_spec=pltpu.PrefetchScalarGridSpec(
            num_scalar_prefetch=0,
            grid=(num_parts, tiles_per_part),
            in_specs=[in_spec, in_spec],
            out_specs=pl.BlockSpec((acc_rows, C), lambda p, i: (p, 0)),
            scratch_shapes=[pltpu.VMEM((acc_rows, C), jnp.float32)],
        ),
        compiler_params=pltpu.CompilerParams(
            dimension_semantics=("parallel", "arbitrary")),
        cost_estimate=cost,
    )(pred, target)

    # Final tiny reduce + mean outside the kernel (keeps the parallel axis
    # race-free when parts run on different TensorCores).
    return jnp.sum(partials) / jnp.float32(N * C)


class Bbox:
    """JAX/Pallas port of the PyTorch Bbox module (sigmoid focal loss, mean)."""

    def __init__(self):
        self._loss = jax.jit(sigmoid_focal_loss_pallas)

    def __call__(self, pred, target):
        return self._loss(pred, target)


def _reference(pred, target):
    """Pure-JAX reference for correctness check."""
    x = pred.astype(jnp.float32)
    t = target.astype(jnp.float32)
    ps = jax.nn.sigmoid(x)
    pt = (1 - ps) * t + ps * (1 - t)
    fw = (ALPHA * t + (1 - ALPHA) * (1 - t)) * pt ** GAMMA
    bce = jnp.maximum(x, 0.0) - x * t + jnp.log1p(jnp.exp(-jnp.abs(x)))
    return jnp.mean(bce * fw)


if __name__ == "__main__":
    key = jax.random.PRNGKey(0)
    k1, k2 = jax.random.split(key)

    # Small (N, C) that exercises the ragged-row-tile (masked) path and the
    # non-multiple-of-128 class dimension.
    N, C = 50, 80  # (num_samples, num_classes)
    pred = jax.random.normal(k1, (N, C), dtype=jnp.float32)
    # binary-style targets in {0, 1}, cast to float (target.type_as(pred))
    target = (jax.random.uniform(k2, (N, C)) > 0.5).astype(jnp.float32)

    model = Bbox()
    loss = jax.block_until_ready(model(pred, target))

    ref = _reference(pred, target)
    assert jnp.allclose(loss, ref, rtol=1e-5, atol=1e-6), (loss, ref)

    print("KERNEL_OK")
</pallas_src>

<mosaic_0001>
module attributes {stable_mosaic.version = 11 : i64} {
  func.func @_focal_loss_kernel(%arg0: i32, %arg1: i32, %arg2: memref<48x80xf32, #tpu.memory_space<vmem>>, %arg3: memref<48x80xf32, #tpu.memory_space<vmem>>, %arg4: memref<8x80xf32, #tpu.memory_space<vmem>>, %arg5: memref<8x80xf32, #tpu.memory_space<vmem>>) attributes {dimension_semantics = [#tpu.dimension_semantics<parallel>, #tpu.dimension_semantics<arbitrary>], iteration_bounds = array<i64: 1, 2>, scalar_prefetch = 0 : i64, scratch_operands = 1 : i64, tpu.core_type = #tpu.core_type<tc>, window_params = [{transform_indices = @transform_0, window_bounds = array<i64: 48, 80>}, {transform_indices = @transform_1, window_bounds = array<i64: 48, 80>}, {transform_indices = @transform_2, window_bounds = array<i64: 8, 80>}]} {
    %c0_i32 = arith.constant 0 : i32
    %0 = arith.cmpi eq, %arg1, %c0_i32 : i32
    %1 = arith.extui %0 : i1 to i32
    %c0_i32_0 = arith.constant 0 : i32
    %2 = arith.cmpi ne, %1, %c0_i32_0 : i32
    scf.if %2 {
      %cst_15 = arith.constant 0.000000e+00 : f32
      %48 = vector.broadcast %cst_15 : f32 to vector<8x80xf32>
      %c0_16 = arith.constant 0 : index
      %c0_17 = arith.constant 0 : index
      %49 = vector.load %arg5[%c0_16, %c0_17] : memref<8x80xf32, #tpu.memory_space<vmem>>, vector<8x80xf32>
      tpu.vector_store %arg5[%c0_16, %c0_17], %48 {strides = array<i32>} : memref<8x80xf32, #tpu.memory_space<vmem>>, vector<8x80xf32>,
    } else {
    }
    %c0 = arith.constant 0 : index
    %c0_1 = arith.constant 0 : index
    %3 = vector.load %arg2[%c0, %c0_1] : memref<48x80xf32, #tpu.memory_space<vmem>>, vector<48x80xf32>
    %c0_2 = arith.constant 0 : index
    %c0_3 = arith.constant 0 : index
    %4 = vector.load %arg3[%c0_2, %c0_3] : memref<48x80xf32, #tpu.memory_space<vmem>>, vector<48x80xf32>
    %5 = math.absf %3 : vector<48x80xf32>
    %cst = arith.constant 0.000000e+00 : f32
    %6 = vector.broadcast %cst : f32 to vector<48x80xf32>
    %7 = arith.subf %6, %5 : vector<48x80xf32>
    %8 = math.exp %7 : vector<48x80xf32>
    %cst_4 = arith.constant 1.000000e+00 : f32
    %9 = vector.broadcast %cst_4 : f32 to vector<48x80xf32>
    %10 = arith.addf %9, %8 : vector<48x80xf32>
    %cst_5 = arith.constant 1.000000e+00 : f32
    %11 = vector.broadcast %cst_5 : f32 to vector<48x80xf32>
    %12 = arith.divf %11, %10 : vector<48x80xf32>
    %cst_6 = arith.constant 0.000000e+00 : f32
    %13 = vector.broadcast %cst_6 : f32 to vector<48x80xf32>
    %14 = arith.cmpf oge, %3, %13 : vector<48x80xf32>
    %15 = arith.mulf %8, %12 : vector<48x80xf32>
    %16 = arith.select %14, %12, %15 : vector<48x80xi1>, vector<48x80xf32>
    %17 = arith.addf %16, %4 : vector<48x80xf32>
    %cst_7 = arith.constant 2.000000e+00 : f32
    %18 = vector.broadcast %cst_7 : f32 to vector<48x80xf32>
    %19 = arith.mulf %18, %16 : vector<48x80xf32>
    %20 = arith.mulf %19, %4 : vector<48x80xf32>
    %21 = arith.subf %17, %20 : vector<48x80xf32>
    %cst_8 = arith.constant -5.000000e-01 : f32
    %22 = vector.broadcast %cst_8 : f32 to vector<48x80xf32>
    %23 = arith.mulf %22, %4 : vector<48x80xf32>
    %cst_9 = arith.constant 7.500000e-01 : f32
    %24 = vector.broadcast %cst_9 : f32 to vector<48x80xf32>
    %25 = arith.addf %24, %23 : vector<48x80xf32>
    %26 = arith.mulf %21, %21 : vector<48x80xf32>
    %27 = arith.mulf %25, %26 : vector<48x80xf32>
    %cst_10 = arith.constant 0.000000e+00 : f32
    %28 = vector.broadcast %cst_10 : f32 to vector<48x80xf32>
    %29 = arith.maximumf %3, %28 : vector<48x80xf32>
    %30 = arith.mulf %3, %4 : vector<48x80xf32>
    %31 = arith.subf %29, %30 : vector<48x80xf32>
    %32 = math.log1p %8 : vector<48x80xf32>
    %33 = arith.addf %31, %32 : vector<48x80xf32>
    %34 = arith.mulf %33, %27 : vector<48x80xf32>
    %c2_i32 = arith.constant 2 : i32
    %35 = arith.muli %arg0, %c2_i32 : i32
    %36 = arith.addi %35, %arg1 : i32
    %c1_i32 = arith.constant 1 : i32
    %37 = arith.addi %36, %c1_i32 : i32
    %c48_i32 = arith.constant 48 : i32
    %38 = arith.muli %37, %c48_i32 : i32
    %c50_i32 = arith.constant 50 : i32
    %39 = arith.cmpi sgt, %38, %c50_i32 : i32
    %true = arith.constant true
    %40 = arith.xori %39, %true : i1
    %41 = arith.extui %40 : i1 to i32
    %c0_i32_11 = arith.constant 0 : i32
    %42 = arith.cmpi ne, %41, %c0_i32_11 : i32
    scf.if %42 {
      %c0_15 = arith.constant 0 : index
      %c0_16 = arith.constant 0 : index
      %48 = vector.load %arg5[%c0_15, %c0_16] : memref<8x80xf32, #tpu.memory_space<vmem>>, vector<8x80xf32>
      %49 = vector.shape_cast %34 : vector<48x80xf32> to vector<6x8x80xf32>
      %cst_17 = arith.constant dense<0.000000e+00> : vector<8x80xf32>
      %50 = vector.multi_reduction <add>, %49, %cst_17 [0] : vector<6x8x80xf32> to vector<8x80xf32>
      %51 = arith.addf %48, %50 : vector<8x80xf32>
      %c0_18 = arith.constant 0 : index
      %c0_19 = arith.constant 0 : index
      %52 = vector.load %arg5[%c0_18, %c0_19] : memref<8x80xf32, #tpu.memory_space<vmem>>, vector<8x80xf32>
      tpu.vector_store %arg5[%c0_18, %c0_19], %51 {strides = array<i32>} : memref<8x80xf32, #tpu.memory_space<vmem>>, vector<8x80xf32>,
    } else {
    }
    %43 = arith.extui %39 : i1 to i32
    %c0_i32_12 = arith.constant 0 : i32
    %44 = arith.cmpi ne, %43, %c0_i32_12 : i32
    scf.if %44 {
      %48 = tpu.iota {dimensions = array<i32: 0>} : vector<48x80xi32>
      %c48_i32_15 = arith.constant 48 : i32
      %49 = arith.muli %36, %c48_i32_15 : i32
      %50 = vector.broadcast %49 : i32 to vector<48x80xi32>
      %51 = arith.addi %48, %50 : vector<48x80xi32>
      %c0_16 = arith.constant 0 : index
      %c0_17 = arith.constant 0 : index
      %52 = vector.load %arg5[%c0_16, %c0_17] : memref<8x80xf32, #tpu.memory_space<vmem>>, vector<8x80xf32>
      %c50_i32_18 = arith.constant 50 : i32
      %53 = vector.broadcast %c50_i32_18 : i32 to vector<48x80xi32>
      %54 = arith.cmpi slt, %51, %53 : vector<48x80xi32>
      %cst_19 = arith.constant 0.000000e+00 : f32
      %55 = vector.broadcast %cst_19 : f32 to vector<48x80xf32>
      %56 = arith.select %54, %34, %55 : vector<48x80xi1>, vector<48x80xf32>
      %57 = vector.shape_cast %56 : vector<48x80xf32> to vector<6x8x80xf32>
      %cst_20 = arith.constant dense<0.000000e+00> : vector<8x80xf32>
      %58 = vector.multi_reduction <add>, %57, %cst_20 [0] : vector<6x8x80xf32> to vector<8x80xf32>
      %59 = arith.addf %52, %58 : vector<8x80xf32>
      %c0_21 = arith.constant 0 : index
      %c0_22 = arith.constant 0 : index
      %60 = vector.load %arg5[%c0_21, %c0_22] : memref<8x80xf32, #tpu.memory_space<vmem>>, vector<8x80xf32>
      tpu.vector_store %arg5[%c0_21, %c0_22], %59 {strides = array<i32>} : memref<8x80xf32, #tpu.memory_space<vmem>>, vector<8x80xf32>,
    } else {
    }
    %c1_i32_13 = arith.constant 1 : i32
    %45 = arith.cmpi eq, %arg1, %c1_i32_13 : i32
    %46 = arith.extui %45 : i1 to i32
    %c0_i32_14 = arith.constant 0 : i32
    %47 = arith.cmpi ne, %46, %c0_i32_14 : i32
    scf.if %47 {
      %c0_15 = arith.constant 0 : index
      %c0_16 = arith.constant 0 : index
      %48 = vector.load %arg5[%c0_15, %c0_16] : memref<8x80xf32, #tpu.memory_space<vmem>>, vector<8x80xf32>
      %c0_17 = arith.constant 0 : index
      %c0_18 = arith.constant 0 : index
      %49 = vector.load %arg4[%c0_17, %c0_18] : memref<8x80xf32, #tpu.memory_space<vmem>>, vector<8x80xf32>
      tpu.vector_store %arg4[%c0_17, %c0_18], %48 {strides = array<i32>} : memref<8x80xf32, #tpu.memory_space<vmem>>, vector<8x80xf32>,
    } else {
    }
    return
  }
  func.func @transform_0(%arg0: i32, %arg1: i32) -> (i32, i32) {
    %c2_i32 = arith.constant 2 : i32
    %0 = arith.muli %arg0, %c2_i32 : i32
    %1 = arith.addi %0, %arg1 : i32
    %c1_i32 = arith.constant 1 : i32
    %2 = arith.minsi %1, %c1_i32 : i32
    %c0_i32 = arith.constant 0 : i32
    %c0_i32_0 = arith.constant 0 : i32
    return %2, %c0_i32 : i32, i32
  }
  func.func @transform_1(%arg0: i32, %arg1: i32) -> (i32, i32) {
    %c2_i32 = arith.constant 2 : i32
    %0 = arith.muli %arg0, %c2_i32 : i32
    %1 = arith.addi %0, %arg1 : i32
    %c1_i32 = arith.constant 1 : i32
    %2 = arith.minsi %1, %c1_i32 : i32
    %c0_i32 = arith.constant 0 : i32
    %c0_i32_0 = arith.constant 0 : i32
    return %2, %c0_i32 : i32, i32
  }
  func.func @transform_2(%arg0: i32, %arg1: i32) -> (i32, i32) {
    %c0_i32 = arith.constant 0 : i32
    %c0_i32_0 = arith.constant 0 : i32
    return %arg0, %c0_i32 : i32, i32
  }
}

</mosaic_0001>

<bundles_post_ra>
// kernel: sigmoid_focal_loss_pallas.1
= control target key start
LH: loop header
LB: loop body
LE: loop exit
PB: predicated region body
PF: predicated region fallthrough
CT: control target
= control target key end

     0   :  { %7 = vsyncpa [#allocation4], 0  ;;  %s1310_s0 = inlined_call_operand.hbm [shape: f32[50,80], index: 0, kind: input, shape index: {}]   ;;  %s1311_s1 = inlined_call_operand.hbm [shape: f32[50,80], index: 1, kind: input, shape index: {}]   ;;  %s1312_s2 = inlined_call_operand.vmem [shape: f32[8,80], index: 2, kind: output, shape index: {}]  }
   0x1   :  { %9 = vsyncpa [#allocation4 + $0x1], 0 }
   0x2   :  { %10 = vsyncpa [#allocation6], 0 }
   0x3   :  { %12 = vsyncpa [#allocation6 + $0x1], 0  ;;  %s898_s9 = smov 0   ;;  %s900_s10 = smov 0  }
   0x4   :  { %s902_s11 = smov 0   ;;  %s904_s12 = smov 0  }
   0x5   :  { %s906_s13 = smov 0   ;;  %s908_s14 = smov 0  }
   0x6 LB: > { %s27_s15 = sadd.s32 1, %s870_s13  ;;  %p36_p1 = scmp.lt.s32.totalorder %s870_s13, 1  ;;  %s874_s14 = sphi %s908_s14, %s18_s14   ;;  %s870_s13 = sphi %s906_s13, %s1331_s13   ;;  %s866_s12 = sphi %s904_s12, %s1330_s12   ;;  %s862_s11 = sphi %s902_s11, %s1329_s11   ;;  %s858_s10 = sphi %s900_s10, %s1328_s10   ;;  %s854_s9 = sphi %s898_s9, %s1327_s9  }
   0x7   : > { %p28_p0 = scmp.ge.s32.totalorder %s27_s15, 2  ;;  %s647_s16 = sadd.s32 4294967295, %s874_s14  }
   0x8   : > { %p52_p2 = scmp.ne.s32.totalorder %s862_s11, %s858_s10  ;;  %p53_p4 = scmp.eq.s32.totalorder %s874_s14, 0 }
   0x9   : > { %s1333_s15 = smov (%p28_p0, %s27_s15), 0  ;;  %p58_p5 = scmp.ne.s32.totalorder %s858_s10, %s854_s9 }
   0xa   : > { %s934_s17 = scalar_select %p36_p1, %s870_s13, 1 }
   0xb   : > { %p40_p3 = scmp.lt.s32.totalorder %s1333_s15, 1  ;;  %p59_p6 = scmp.eq.s32.totalorder %s647_s16, 0 }
   0xc   : > { %p940_p7 = por %p53_p4, %p52_p2  ;;  %s45_s22 = sadd.s32 1, %s862_s11 }
   0xd   : > { %s41_s18 = scalar_select %p40_p3, %s1333_s15, 1 }
   0xe   : > { %p944_p8 = por %p59_p6, %p58_p5  ;;  %p649_p10 = scmp.ge.s32.totalorder %s874_s14, 2 }
   0xf   : > { %s42_s21 = ssub.s32 %s934_s17, %s41_s18 }
  0x10   : > { %p43_p9 = scmp.eq.s32.totalorder %s42_s21, 0  ;;  %138 = sbr.rel (%p649_p10) target bundleno = 93 (0x5d), region = 16 }
  0x12   : > { %s951_s23 = scalar_select %p43_p9, %s862_s11, %s45_s22  }
  0x17   : > { %141 = sbr.rel (!%p940_p7) target bundleno = 58 (0x3a), region = 20  ;;  %s142_s24 = sand.u32 (%p940_p7), 1, %s862_s11  }
  0x18   : > { %s151_s25 = smul.u32 (%p940_p7), 6, %s934_s17  ;;  %s961_s30 = scalar_lea.sflag (%p940_p7), [#allocation4], %s142_s24 }
  0x19   : > { %s670_s26 = smul.u32 (%p940_p7), 48, %s142_s24 }
  0x1a   : > { %s152_s27 = ssub.s32 (%p940_p7), 7, %s151_s25 }
  0x1b   : > { %p153_p11 = scmp.lt.s32.totalorder (%p940_p7), %s152_s27, 6  ;;  %s146_s3 = scalar_lea.vmem (%p940_p7), [#allocation3], %s670_s26 }
  0x1e   : > { %s1335_s27 = smov (!%p153_p11, %s152_s27), 6 }
  0x1f   : > { %s958_s28 = sshll.u32 %s1335_s27, 7 }
  0x20   : > { %s157_s29 = ssub.s32 768, %s958_s28 }
  0x21   : > { %158 = vsyncadd %s961_s30, %s157_s29  ;;  %p651_p12 = scmp.ne.s32.totalorder %s958_s28, 0  ;;  %s668_s4 = smul.u32 768, %s934_s17 }
  0x22   : > { %s163_s5 = sshll.u32 %s146_s3, 4  ;;  %s768_s21 = scalar_lea.hbm %s1310_s0, 896  ;;  %s971_s5 = int_to_ptr.vmem [resolvable:$true] %s163_s5 }
  0x23   : > { %s969_s8 = scalar_lea.hbm %s1310_s0, %s668_s4 }
  0x24   : > { %s764_s9 = scalar_lea.hbm %s969_s8, %s958_s28  ;;  %p769_p2 = scmp.lt.u32.totalorder %s969_s8, %s1310_s0 }
  0x25   : > { %p765_p13 = scmp.ne.s32.totalorder %s969_s8, %s764_s9  ;;  %p770_p3 = scmp.lt.u32.totalorder %s768_s21, %s764_s9 }
  0x26   : > { %p772_p5 = scmp.lt.u32.totalorder %s764_s9, %s969_s8 }
  0x27   : > { %p766_p0 = pnand %p765_p13, %p651_p12  ;;  %p771_p4 = por %p770_p3, %p769_p2 }
  0x29   : > { %p767_p1 = pneg %p766_p0  ;;  %p773_p6 = por %p772_p5, %p771_p4 }
  0x2b   : > { %p774_p9 = pnand %p773_p6, %p767_p1 }
  0x2d   : > { %777 = shalt.err (!%p774_p9)
}
  0x2e   : > { %s778_s25 = scalar_lea.vmem %s971_s5, %s958_s28  ;;  %s876_s26 = smov [#allocation3]  }
  0x2f   : > { %p779_p10 = scmp.ne.s32.totalorder %s971_s5, %s778_s25  ;;  %s782_s27 = sshll.u32 %s876_s26, 4  ;;  %s783_s27 = int_to_ptr.vmem [resolvable:$false] %s782_s27 }
  0x30   : > { %s784_s29 = scalar_lea.vmem %s783_s27, 1536  ;;  %p785_p0 = scmp.lt.s32.totalorder %s971_s5, %s783_s27 }
  0x31   : > { %p780_p11 = pnand %p779_p10, %p651_p12  ;;  %p786_p2 = scmp.lt.s32.totalorder %s784_s29, %s778_s25 }
  0x33   : > { %p781_p13 = pneg %p780_p11  ;;  %p787_p3 = por %p786_p2, %p785_p0 }
  0x35   : > { %p788_p4 = pnand %p787_p3, %p781_p13 }
  0x37   : > { %791 = shalt.err (!%p788_p4)
}
  0x38   : > { %s877_s3 = smov 128   ;;  %s878_s4 = smov 8  }
  0x39   : > { %169 = dma.hbm_to_vmem [thread:$0]  (%p651_p12), %s969_s8, %s958_s28, %s971_s5, %s961_s30, %s877_s3, %s877_s3, %s878_s4  }
  0x3a PF: > { %172 = sbr.rel (!%p940_p7) target bundleno = 93 (0x5d), region = 24  ;;  %s173_s6 = sand.u32 (%p940_p7), 1, %s862_s11  }
  0x3b   : > { %s182_s7 = smul.u32 (%p940_p7), 6, %s934_s17  ;;  %s1005_s22 = scalar_lea.sflag (%p940_p7), [#allocation6], %s173_s6 }
  0x3c   : > { %s671_s9 = smul.u32 (%p940_p7), 48, %s173_s6 }
  0x3d   : > { %s183_s16 = ssub.s32 (%p940_p7), 7, %s182_s7 }
  0x3e   : > { %p184_p1 = scmp.lt.s32.totalorder (%p940_p7), %s183_s16, 6  ;;  %s177_s28 = scalar_lea.vmem (%p940_p7), [#allocation5], %s671_s9 }
  0x41   : > { %s1337_s16 = smov (!%p184_p1, %s183_s16), 6 }
  0x42   : > { %s1002_s18 = sshll.u32 %s1337_s16, 7 }
  0x43   : > { %s188_s21 = ssub.s32 768, %s1002_s18 }
  0x44   : > { %189 = vsyncadd %s1005_s22, %s188_s21  ;;  %p656_p7 = scmp.ne.s32.totalorder %s1002_s18, 0  ;;  %s669_s19 = smul.u32 768, %s934_s17 }
  0x45   : > { %s194_s30 = sshll.u32 %s177_s28, 4  ;;  %s796_s17 = scalar_lea.hbm %s1311_s1, 896  ;;  %s1015_s30 = int_to_ptr.vmem [resolvable:$true] %s194_s30 }
  0x46   : > { %s1013_s24 = scalar_lea.hbm %s1311_s1, %s669_s19 }
  0x47   : > { %s792_s25 = scalar_lea.hbm %s1013_s24, %s1002_s18  ;;  %p797_p9 = scmp.lt.u32.totalorder %s1013_s24, %s1311_s1 }
  0x48   : > { %p793_p12 = scmp.ne.s32.totalorder %s1013_s24, %s792_s25  ;;  %p798_p10 = scmp.lt.u32.totalorder %s796_s17, %s792_s25 }
  0x49   : > { %p800_p13 = scmp.lt.u32.totalorder %s792_s25, %s1013_s24 }
  0x4a   : > { %p794_p5 = pnand %p793_p12, %p656_p7  ;;  %p799_p11 = por %p798_p10, %p797_p9 }
  0x4c   : > { %p795_p6 = pneg %p794_p5  ;;  %p801_p0 = por %p800_p13, %p799_p11 }
  0x4e   : > { %p802_p2 = pnand %p801_p0, %p795_p6 }
  0x50   : > { %805 = shalt.err (!%p802_p2)
}
  0x51   : > { %s806_s4 = scalar_lea.vmem %s1015_s30, %s1002_s18  ;;  %s879_s6 = smov [#allocation5]  }
  0x52   : > { %p807_p3 = scmp.ne.s32.totalorder %s1015_s30, %s806_s4  ;;  %s810_s7 = sshll.u32 %s879_s6, 4  ;;  %s811_s7 = int_to_ptr.vmem [resolvable:$false] %s810_s7 }
  0x53   : > { %s812_s9 = scalar_lea.vmem %s811_s7, 1536  ;;  %p813_p12 = scmp.lt.s32.totalorder %s1015_s30, %s811_s7 }
  0x54   : > { %p808_p4 = pnand %p807_p3, %p656_p7  ;;  %p814_p5 = scmp.lt.s32.totalorder %s812_s9, %s806_s4 }
  0x56   : > { %p809_p1 = pneg %p808_p4  ;;  %p815_p9 = por %p814_p5, %p813_p12 }
  0x58   : > { %p816_p10 = pnand %p815_p9, %p809_p1 }
  0x5a   : > { %819 = shalt.err (!%p816_p10)
}
  0x5b   : > { %s880_s16 = smov 128   ;;  %s881_s21 = smov 8  }
  0x5c   : > { %200 = dma.hbm_to_vmem [thread:$0]  (%p656_p7), %s1013_s24, %s1002_s18, %s1015_s30, %s1005_s22, %s880_s16, %s880_s16, %s881_s21  }
  0x5d PF: > { %p660_p6 = scmp.ge.s32.totalorder %s874_s14, 1  ;;  %p202_p11 = scmp.lt.s32.totalorder %s874_s14, 3 }
  0x5f   : > { %p203_p13 = pnand %p660_p6, %p202_p11 }
  0x60   : > { %s208_s28 = sand.u32 (!%p203_p13), 1, %s858_s10  }
  0x61   : > { %206 = sbr.rel (%p203_p13) target bundleno = 215 (0xd7), region = 28  ;;  %s209_s5 = scalar_lea.sflag (!%p203_p13), [#allocation4], %s208_s28 }
  0x62   : > { %s672_s19 = smul.u32 (!%p203_p13), 48, %s208_s28 }
  0x64   : > { %s212_s8 = scalar_lea.vmem (!%p203_p13), [#allocation3], %s672_s19 }
  0x68   : > { %845 = dma.done.wait (%p944_p8), %s209_s5, 768  }
  0x69   : > { %847 = vsyncadd (%p944_p8), %s209_s5, 4294966528  ;;  %s218_s18 = scalar_lea.sflag [#allocation6], %s208_s28  ;;  %s1049_s22 = scalar_lea.vmem [#allocation5], %s672_s19 }
  0x6a   : > { %849 = dma.done.wait (%p944_p8), %s218_s18, 768  }
  0x6b   : > { %851 = vsyncadd (%p944_p8), %s218_s18, 4294966528  ;;  %p661_p7 = scmp.ne.s32.totalorder %s866_s12, 0 }
  0x6c   : > { %vm272_vm0 = vcmask (!%p661_p7), 654336   ;;  %v882_v0 = vmov (!%p661_p7), 0.0  }
  0x6d   : > { %271 = sbr.rel (%p661_p7) target bundleno = 116 (0x74), region = 40  ;;  %273 = vst.msk [vmem:[#allocation2] sm:$0xff] (!%p661_p7), %vm272_vm0, %v882_v0 }
  0x74 PF: > { %v1056_v1 = vld [vmem:[%s212_s8] sm:$0xff]  ;;  %v1058_v2 = vld [vmem:[%s212_s8 + $0x8] sm:$0xff]  ;;  %v1060_v3 = vld [vmem:[%s212_s8 + $0x10] sm:$0xff]  ;;  %s480_s20 = sadd.s32 1, %s866_s12 }
  0x75   : > { %v1062_v4 = vld [vmem:[%s212_s8 + $0x18] sm:$0xff]  ;;  %v1064_v5 = vld [vmem:[%s212_s8 + $0x20] sm:$0xff]  ;;  %v1066_v6 = vld [vmem:[%s212_s8 + $0x28] sm:$0xff]  ;;  %v286_v7 = vand.u32 2147483647, %v1056_v1  ;;  %s1075_s30 = smul.u32 48, %s480_s20 }
  0x76   : > { %v287_v8 = vand.u32 2147483647, %v1058_v2  ;;  %v288_v9 = vand.u32 2147483647, %v1060_v3  ;;  %v289_v11 = vand.u32 2147483647, %v1062_v4 }
  0x77   : > { %v292_v10 = vsub.f32 0.0, %v286_v7  ;;  %v290_v12 = vand.u32 2147483647, %v1064_v5  ;;  %v291_v13 = vand.u32 2147483647, %v1066_v6  ;;  %v1078_v25 = vld [vmem:[%s1049_s22] sm:$0xff] }
  0x78   : > { %v293_v14 = vsub.f32 0.0, %v287_v8  ;;  %v294_v15 = vsub.f32 0.0, %v288_v9  ;;  %v295_v17 = vsub.f32 0.0, %v289_v11  ;;  %v1081_v26 = vld [vmem:[%s1049_s22 + $0x8] sm:$0xff]  ;;  %v1084_v27 = vld [vmem:[%s1049_s22 + $0x10] sm:$0xff]  ;;  %v1087_v28 = vld [vmem:[%s1049_s22 + $0x18] sm:$0xff]  ;;  %v400_v37 = vmul.f32 %v1078_v25, %v1056_v1 }
  0x79   : > { %v298_v16 = vmul.f32 1.442695, %v292_v10  ;;  %v296_v18 = vsub.f32 0.0, %v290_v12  ;;  %v297_v19 = vsub.f32 0.0, %v291_v13  ;;  %v1090_v29 = vld [vmem:[%s1049_s22 + $0x20] sm:$0xff]  ;;  %v370_v30 = vmul.f32 -0.5, %v1078_v25 }
  0x7a   : > { %v300_v20 = vmul.f32 1.442695, %v293_v14  ;;  %v302_v21 = vmul.f32 1.442695, %v294_v15  ;;  %v304_v22 = vmul.f32 1.442695, %v295_v17  ;;  %v401_v38 = vmul.f32 %v1081_v26, %v1058_v2 }
  0x7b   : > { %728 = vpow2.f32 %v298_v16  ;;  %v306_v23 = vmul.f32 1.442695, %v296_v18  ;;  %v308_v24 = vmul.f32 1.442695, %v297_v19  ;;  %v371_v31 = vmul.f32 -0.5, %v1081_v26  ;;  %v1095_v32 = vld [vmem:[%s1049_s22 + $0x28] sm:$0xff] }
  0x7c   : > { %730 = vpow2.f32 %v300_v20  ;;  %v372_v33 = vmul.f32 -0.5, %v1084_v27  ;;  %v373_v34 = vmul.f32 -0.5, %v1087_v28  ;;  %v374_v35 = vmul.f32 -0.5, %v1090_v29  ;;  %p662_p8 = scmp.gt.s32.totalorder %s1075_s30, 50 }
  0x7d   : > { %732 = vpow2.f32 %v302_v21  ;;  %v375_v36 = vmul.f32 -0.5, %v1095_v32  ;;  %v1107_v40 = vadd.f32 0.75, %v370_v30  ;;  %v1109_v41 = vadd.f32 0.75, %v371_v31 }
  0x7e   : > { %734 = vpow2.f32 %v304_v22  ;;  %v402_v42 = vmul.f32 %v1084_v27, %v1060_v3  ;;  %v403_v43 = vmul.f32 %v1087_v28, %v1062_v4  ;;  %v1116_v45 = vadd.f32 0.75, %v372_v33 }
  0x7f   : > { %736 = vpow2.f32 %v306_v23  ;;  %v1118_v46 = vadd.f32 0.75, %v373_v34  ;;  %v1120_v47 = vadd.f32 0.75, %v374_v35  ;;  %v1124_v49 = vadd.f32 0.75, %v375_v36 }
  0x80   : > { %738 = vpow2.f32 %v308_v24  ;;  %v394_v50 = vmax.f32 %v1056_v1, 0.0  ;;  %v395_v51 = vmax.f32 %v1058_v2, 0.0  ;;  %v396_v52 = vmax.f32 %v1060_v3, 0.0 }
  0x81   : > { %v397_v55 = vmax.f32 %v1062_v4, 0.0  ;;  %v398_v56 = vmax.f32 %v1064_v5, 0.0  ;;  %v399_v59 = vmax.f32 %v1066_v6, 0.0  ;;  %v404_v60 = vmul.f32 %v1090_v29, %v1064_v5 }
  0x82   : > { %vm328_vm1 = vcmp.ge.f32.partialorder %v1056_v1, 0.0  ;;  %v405_v9 = vmul.f32 %v1095_v32, %v1066_v6  ;;  %vm329_vm2 = vcmp.ge.f32.partialorder %v1058_v2, 0.0  ;;  %v406_v12 = vsub.f32 %v394_v50, %v400_v37 }
  0x83   : > { %v1154_v13 = vsub.f32 %v395_v51, %v401_v38  ;;  %vm330_vm3 = vcmp.ge.f32.partialorder %v1060_v3, 0.0  ;;  %v1157_v14 = vsub.f32 %v396_v52, %v402_v42  ;;  %vm331_vm4 = vcmp.ge.f32.partialorder %v1062_v4, 0.0 }
  0x84   : > { %vm332_vm5 = vcmp.ge.f32.partialorder %v1064_v5, 0.0  ;;  %v1164_v20 = vsub.f32 %v397_v55, %v403_v43  ;;  %v1166_v21 = vsub.f32 %v398_v56, %v404_v60  ;;  %v1168_v22 = vsub.f32 %v399_v59, %v405_v9 }
  0x85   : > { %v1105_v39 = vpop.eup %728  ;;  %vm333_vm6 = vcmp.ge.f32.partialorder %v1066_v6, 0.0  ;;  %vm488_vm13 = vcmask (!%p662_p8), 654336  }
  0x86   : > { %v310_v44 = vadd.f32 1.0, %v1105_v39  ;;  %v1122_v48 = vpop.eup %730  ;;  %v415_v63 = vmul.f32 -0.5, %v1105_v39  ;;  %v418_v15 = vand.u32 2147483647, %v1105_v39 }
  0x87   : > { %v1129_v53 = vpop.eup %732  ;;  %v311_v54 = vadd.f32 1.0, %v1122_v48  ;;  %v424_v0 = vmul.f32 -0.5, %v1122_v48  ;;  %v427_v24 = vand.u32 2147483647, %v1122_v48 }
  0x88   : > { %740 = vrcp.f32 %v310_v44  ;;  %v1134_v57 = vpop.eup %734  ;;  %v312_v58 = vadd.f32 1.0, %v1129_v53  ;;  %v433_v10 = vmul.f32 -0.5, %v1129_v53  ;;  %v416_v17 = vadd.f32 1.0, %v415_v63 }
  0x89   : > { %742 = vlog2.f32 %v310_v44  ;;  %v1140_v61 = vpop.eup %736  ;;  %v313_v62 = vadd.f32 1.0, %v1134_v57  ;;  %v442_v16 = vmul.f32 -0.5, %v1134_v57  ;;  %v425_v18 = vadd.f32 1.0, %v424_v0 }
  0x8a   : > { %744 = vrcp.f32 %v311_v54  ;;  %v1146_v7 = vpop.eup %738  ;;  %v314_v8 = vadd.f32 1.0, %v1140_v61  ;;  %v451_v19 = vmul.f32 -0.5, %v1140_v61  ;;  %v434_v23 = vadd.f32 1.0, %v433_v10 }
  0x8b   : > { %746 = vrcp.f32 %v312_v58  ;;  %v315_v11 = vadd.f32 1.0, %v1146_v7  ;;  %v443_v30 = vadd.f32 1.0, %v442_v16  ;;  %v460_v31 = vmul.f32 -0.5, %v1146_v7 }
  0x8c   : > { %748 = vrcp.f32 %v313_v62  ;;  %vm1173_vm7 = vcmp.lt.f32.partialorder %v418_v15, 0.0004427343  ;;  %v436_v34 = vand.u32 2147483647, %v1129_v53  ;;  %v452_v35 = vadd.f32 1.0, %v451_v19 }
  0x8d   : > { %750 = vrcp.f32 %v314_v8  ;;  %v417_v37 = vmul.f32 %v1105_v39, %v416_v17  ;;  %v1180_v38 = vmul.f32 %v1122_v48, %v425_v18  ;;  %v445_v42 = vand.u32 2147483647, %v1134_v57 }
  0x8e   : > { %752 = vrcp.f32 %v315_v11  ;;  %v461_v43 = vadd.f32 1.0, %v460_v31  ;;  %v1185_v51 = vmul.f32 %v1129_v53, %v434_v23  ;;  %v454_v52 = vand.u32 2147483647, %v1140_v61 }
  0x8f   : > { %754 = vlog2.f32 %v311_v54  ;;  %vm1188_vm8 = vcmp.lt.f32.partialorder %v427_v24, 0.0004427343  ;;  %v463_v59 = vand.u32 2147483647, %v1146_v7  ;;  %vm1199_vm9 = vcmp.lt.f32.partialorder %v436_v34, 0.0004427343 }
  0x90   : > { %756 = vlog2.f32 %v312_v58  ;;  %v1193_v58 = vmul.f32 %v1134_v57, %v443_v30  ;;  %v1204_v0 = vmul.f32 %v1140_v61, %v452_v35  ;;  %vm1222_vm10 = vcmp.lt.f32.partialorder %v445_v42, 0.0004427343 }
  0x91   : > { %758 = vlog2.f32 %v313_v62  ;;  %vm1230_vm11 = vcmp.lt.f32.partialorder %v454_v52, 0.0004427343  ;;  %vm1238_vm12 = vcmp.lt.f32.partialorder %v463_v59, 0.0004427343 }
  0x92   : > { %v741_v36 = vpop.eup %740  ;;  %760 = vlog2.f32 %v314_v8 }
  0x93   : > { %v743_v44 = vpop.eup %742  ;;  %v334_v50 = vmul.f32 %v741_v36, %v1105_v39  ;;  %762 = vlog2.f32 %v315_v11 }
  0x94   : > { %v745_v54 = vpop.eup %744  ;;  %v414_v55 = vmul.f32 0.6931472, %v743_v44 }
  0x95   : > { %v747_v60 = vpop.eup %746  ;;  %v335_v39 = vmul.f32 %v745_v54, %v1122_v48  ;;  %v340_v62 = vsel %vm328_vm1, %v741_v36, %v334_v50  ;;  %v1210_v48 = vmul.f32 %v1146_v7, %v461_v43 }
  0x96   : > { %v749_v9 = vpop.eup %748  ;;  %v336_v10 = vmul.f32 %v747_v60, %v1129_v53  ;;  %v352_v8 = vmul.f32 2.0, %v340_v62  ;;  %v420_v15 = vsel %vm1173_vm7, %v417_v37, %v414_v55  ;;  %v346_v18 = vadd.f32 %v340_v62, %v1078_v25 }
  0x97   : > { %v751_v1 = vpop.eup %750  ;;  %v337_v16 = vmul.f32 %v749_v9, %v1134_v57  ;;  %v341_v17 = vsel %vm329_vm2, %v745_v54, %v335_v39  ;;  %v1216_v19 = vadd.f32 %v420_v15, %v406_v12 }
  0x98   : > { %v753_v11 = vpop.eup %752  ;;  %v338_v53 = vmul.f32 %v751_v1, %v1140_v61  ;;  %v342_v23 = vsel %vm330_vm3, %v747_v60, %v336_v10  ;;  %v347_v24 = vadd.f32 %v341_v17, %v1081_v26  ;;  %v353_v30 = vmul.f32 2.0, %v341_v17 }
  0x99   : > { %v339_v2 = vmul.f32 %v753_v11, %v1146_v7  ;;  %v343_v57 = vsel %vm331_vm4, %v749_v9, %v337_v16  ;;  %v348_v12 = vadd.f32 %v342_v23, %v1084_v27  ;;  %v354_v33 = vmul.f32 2.0, %v342_v23  ;;  %v755_v3 = vpop.eup %754 }
  0x9a   : > { %v344_v34 = vsel %vm332_vm5, %v751_v1, %v338_v53  ;;  %v349_v35 = vadd.f32 %v343_v57, %v1087_v28  ;;  %v355_v36 = vmul.f32 2.0, %v343_v57  ;;  %v358_v37 = vmul.f32 %v352_v8, %v1078_v25  ;;  %v757_v4 = vpop.eup %756 }
  0x9b   : > { %v345_v42 = vsel %vm333_vm6, %v753_v11, %v339_v2  ;;  %v350_v43 = vadd.f32 %v344_v34, %v1090_v29  ;;  %v356_v44 = vmul.f32 2.0, %v344_v34  ;;  %v359_v50 = vmul.f32 %v353_v30, %v1081_v26  ;;  %v759_v55 = vpop.eup %758 }
  0x9c   : > { %v351_v5 = vadd.f32 %v345_v42, %v1095_v32  ;;  %v357_v52 = vmul.f32 2.0, %v345_v42  ;;  %v360_v54 = vmul.f32 %v354_v33, %v1084_v27  ;;  %v361_v25 = vmul.f32 %v355_v36, %v1087_v28  ;;  %v761_v6 = vpop.eup %760 }
  0x9d   : > { %v362_v59 = vmul.f32 %v356_v44, %v1090_v29  ;;  %v364_v60 = vsub.f32 %v346_v18, %v358_v37  ;;  %v365_v39 = vsub.f32 %v347_v24, %v359_v50  ;;  %v423_v62 = vmul.f32 0.6931472, %v755_v3  ;;  %v763_v26 = vpop.eup %762 }
  0x9e   : > { %v363_v9 = vmul.f32 %v357_v52, %v1095_v32  ;;  %v366_v10 = vsub.f32 %v348_v12, %v360_v54  ;;  %v367_v8 = vsub.f32 %v349_v35, %v361_v25  ;;  %v432_v15 = vmul.f32 0.6931472, %v757_v4  ;;  %v487_v4 = vld [vmem:[#allocation2] sm:$0xff] (!%p662_p8) }
  0x9f   : > { %v368_v1 = vsub.f32 %v350_v43, %v362_v59  ;;  %v382_v16 = vmul.f32 %v364_v60, %v364_v60  ;;  %v383_v17 = vmul.f32 %v365_v39, %v365_v39  ;;  %v429_v27 = vsel %vm1188_vm8, %v1180_v38, %v423_v62 }
  0xa0   : > { %v369_v28 = vsub.f32 %v351_v5, %v363_v9  ;;  %v384_v11 = vmul.f32 %v366_v10, %v366_v10  ;;  %v385_v29 = vmul.f32 %v367_v8, %v367_v8  ;;  %v438_v18 = vsel %vm1199_vm9, %v1185_v51, %v432_v15 }
  0xa1   : > { %v386_v53 = vmul.f32 %v368_v1, %v368_v1  ;;  %v388_v32 = vmul.f32 %v382_v16, %v1107_v40  ;;  %v389_v23 = vmul.f32 %v383_v17, %v1109_v41  ;;  %v441_v24 = vmul.f32 0.6931472, %v759_v55 }
  0xa2   : > { %v387_v30 = vmul.f32 %v369_v28, %v369_v28  ;;  %v390_v2 = vmul.f32 %v384_v11, %v1116_v45  ;;  %v391_v57 = vmul.f32 %v385_v29, %v1118_v46  ;;  %v450_v56 = vmul.f32 0.6931472, %v761_v6  ;;  %486 = sbr.rel (%p662_p8) target bundleno = 181 (0xb5), region = 44 }
  0xa3   : > { %v392_v38 = vmul.f32 %v386_v53, %v1120_v47  ;;  %v447_v12 = vsel %vm1222_vm10, %v1193_v58, %v441_v24  ;;  %v459_v63 = vmul.f32 0.6931472, %v763_v26  ;;  %v467_v51 = vadd.f32 %v429_v27, %v1154_v13 }
  0xa4   : > { %v393_v40 = vmul.f32 %v387_v30, %v1124_v49  ;;  %v456_v41 = vsel %vm1230_vm11, %v1204_v0, %v450_v56  ;;  %v468_v45 = vadd.f32 %v438_v18, %v1157_v14  ;;  %v469_v46 = vadd.f32 %v447_v12, %v1164_v20 }
  0xa5   : > { %v465_v47 = vsel %vm1238_vm12, %v1210_v48, %v459_v63  ;;  %v470_v31 = vadd.f32 %v456_v41, %v1166_v21  ;;  %v472_v58 = vmul.f32 %v1216_v19, %v388_v32  ;;  %v473_v33 = vmul.f32 %v467_v51, %v389_v23 }
  0xa6   : > { %v471_v13 = vadd.f32 %v465_v47, %v1168_v22  ;;  %v474_v49 = vmul.f32 %v468_v45, %v390_v2  ;;  %v475_v3 = vmul.f32 %v469_v46, %v391_v57 }
  0xa7   : > { %v476_v34 = vmul.f32 %v470_v31, %v392_v38  ;;  %v489_v14 = vsel (!%p662_p8), %vm488_vm13, %v472_v58, 0.0  ;;  %v490_v20 = vsel (!%p662_p8), %vm488_vm13, %v473_v33, 0.0 }
  0xa8   : > { %v477_v61 = vmul.f32 %v471_v13, %v393_v40  ;;  %v492_v0 = vsel (!%p662_p8), %vm488_vm13, %v474_v49, 0.0  ;;  %v491_v35 = vadd.f32 (!%p662_p8), %v490_v20, %v489_v14  ;;  %v494_v48 = vsel (!%p662_p8), %vm488_vm13, %v475_v3, 0.0 }
  0xa9   : > { %v496_v21 = vsel %vm488_vm13, %v476_v34, 0.0 }
  0xaa   : > { %v493_v36 = vadd.f32 %v492_v0, %v491_v35  ;;  %v498_v19 = vsel %vm488_vm13, %v477_v61, 0.0 }
  0xac   : > { %v495_v37 = vadd.f32 %v494_v48, %v493_v36 }
  0xae   : > { %v497_v7 = vadd.f32 %v496_v21, %v495_v37 }
  0xb0   : > { %v499_v22 = vadd.f32 %v498_v19, %v497_v7 }
  0xb2   : > { %v500_v42 = vadd.f32 %v499_v22, %v487_v4 }
  0xb4   : > { %501 = vst.msk [vmem:[#allocation2] sm:$0xff] %vm488_vm13, %v500_v42 }
  0xb5 PF: > { %p663_p0 = scmp.le.s32.totalorder %s1075_s30, 50 }
  0xb6   : > { %v505_v43 = vlaneseq (!%p663_p0)  ;;  %s512_s24 = smul.u32 (!%p663_p0), 48, %s866_s12  ;;  %vm533_vm15 = vcmask (!%p663_p0), 654336  }
  0xb7   : > { %504 = sbr.rel (%p663_p0) target bundleno = 206 (0xce), region = 48 }
  0xb8   : > { %v506_v44 = vshrl.u32 (!%p663_p0), %v505_v43, 7  ;;  %v513_v50 = vstv (!%p663_p0), %s512_s24 }
  0xba   : > { %v507_v5 = vadd.s32 (!%p663_p0), 8, %v506_v44  ;;  %v508_v52 = vadd.s32 (!%p663_p0), 16, %v506_v44  ;;  %v509_v54 = vadd.s32 (!%p663_p0), 24, %v506_v44  ;;  %v510_v25 = vadd.s32 (!%p663_p0), 32, %v506_v44 }
  0xbb   : > { %v511_v55 = vadd.s32 (!%p663_p0), 40, %v506_v44  ;;  %v514_v59 = vadd.s32 (!%p663_p0), %v513_v50, %v506_v44  ;;  %v520_v30 = vld [vmem:[#allocation2] sm:$0xff] (!%p663_p0) }
  0xbc   : > { %v515_v60 = vadd.s32 (!%p663_p0), %v513_v50, %v507_v5  ;;  %v516_v39 = vadd.s32 (!%p663_p0), %v513_v50, %v508_v52  ;;  %v517_v62 = vadd.s32 (!%p663_p0), %v513_v50, %v509_v54  ;;  %v518_v6 = vadd.s32 (!%p663_p0), %v513_v50, %v510_v25 }
  0xbd   : > { %v519_v9 = vadd.s32 (!%p663_p0), %v513_v50, %v511_v55  ;;  %vm521_vm14 = vcmp.lt.s32.totalorder (!%p663_p0), %v514_v59, 50 }
  0xbe   : > { %vm522_vm0 = vcmp.lt.s32.totalorder %v515_v60, 50  ;;  %vm523_vm1 = vcmp.lt.s32.totalorder %v516_v39, 50  ;;  %vm524_vm2 = vcmp.lt.s32.totalorder %v517_v62, 50  ;;  %vm525_vm3 = vcmp.lt.s32.totalorder %v518_v6, 50 }
  0xbf   : > { %v527_v10 = vsel %vm521_vm14, %v472_v58, 0.0  ;;  %v528_v8 = vsel %vm522_vm0, %v473_v33, 0.0  ;;  %v529_v15 = vsel %vm523_vm1, %v474_v49, 0.0  ;;  %v530_v26 = vsel %vm524_vm2, %v475_v3, 0.0 }
  0xc0   : > { %v534_v1 = vsel %vm533_vm15, %v527_v10, 0.0  ;;  %vm526_vm4 = vcmp.lt.s32.totalorder %v519_v9, 50  ;;  %v535_v16 = vsel %vm533_vm15, %v528_v8, 0.0  ;;  %v537_v17 = vsel %vm533_vm15, %v529_v15, 0.0 }
  0xc1   : > { %v531_v27 = vsel %vm525_vm3, %v476_v34, 0.0  ;;  %v536_v28 = vadd.f32 %v535_v16, %v534_v1  ;;  %v539_v11 = vsel %vm533_vm15, %v530_v26, 0.0  ;;  %v532_v29 = vsel %vm526_vm4, %v477_v61, 0.0 }
  0xc2   : > { %v541_v53 = vsel %vm533_vm15, %v531_v27, 0.0  ;;  %v543_v23 = vsel %vm533_vm15, %v532_v29, 0.0 }
  0xc3   : > { %v538_v18 = vadd.f32 %v537_v17, %v536_v28 }
  0xc5   : > { %v540_v32 = vadd.f32 %v539_v11, %v538_v18 }
  0xc7   : > { %v542_v24 = vadd.f32 %v541_v53, %v540_v32 }
  0xc9   : > { %v544_v2 = vadd.f32 %v543_v23, %v542_v24 }
  0xcb   : > { %v545_v57 = vadd.f32 %v544_v2, %v520_v30 }
  0xcd   : > { %546 = vst.msk [vmem:[#allocation2] sm:$0xff] %vm533_vm15, %v545_v57 }
  0xce PF: > { %p664_p2 = scmp.ne.s32.totalorder %s866_s12, 1 }
  0xcf   : > { %vm552_vm5 = vcmask (!%p664_p2), 654336  }
  0xd0   : > { %550 = sbr.rel (%p664_p2) target bundleno = 215 (0xd7), region = 52 }
  0xd4   : > { %v551_v56 = vld [vmem:[#allocation2] sm:$0xff] (!%p664_p2) }
  0xd5   : > { %553 = vst.msk [vmem:[%s1312_s2] sm:$0xff] (!%p664_p2), %vm552_vm5, %v551_v56 }
  0xd7 PF: > { %s18_s14 = sadd.s32 1, %s874_s14   ;;  %s1327_s9 = smov %s858_s10 }
  0xd8   : > { %p15_p3 = scmp.ge.s32.totalorder %s18_s14, 4   ;;  %s1328_s10 = smov %s862_s11 }
  0xd9   : > { %s1329_s11 = smov %s951_s23  ;;  %s1330_s12 = smov %s870_s13 }
  0xda   : > { %s1331_s13 = smov %s1333_s15  ;;  %17 = sbr.rel (!%p15_p3) target bundleno = 6 (0x6), region = 97 }
  0xe1   :  { %573 = vsyncpa [#allocation4], 1 }
  0xe2   :  { %575 = vsyncpa [#allocation4 + $0x1], 1 }
  0xe3   :  { %576 = vsyncpa [#allocation6], 1 }
  0xe4   :  { %578 = vsyncpa [#allocation6 + $0x1], 1 }

</bundles_post_ra>
